<compile_context>
chip_gen: v6e
topology: v6e:2x2x1
jax: 0.10.0
libtpu: 0.0.40
codegen_flags: <defaults>
</compile_context>

<pallas_src>
import functools

import jax
import jax.numpy as jnp
from jax import lax
from jax.experimental import pallas as pl
from jax.experimental.pallas import tpu as pltpu

_LN_EPS = 1e-5  # torch.nn.LayerNorm default


def _layer_norm(x, gamma, beta):
    x = x.astype(jnp.float32)
    mu = jnp.mean(x, axis=-1, keepdims=True)
    var = jnp.mean((x - mu) ** 2, axis=-1, keepdims=True)
    return (x - mu) * lax.rsqrt(var + _LN_EPS) * gamma + beta


def _vmem_capacity_bytes():
    try:
        return int(pltpu.get_tpu_info().vmem_capacity_bytes)
    except Exception:
        return 128 * 2 ** 20


# ---------------------------------------------------------------------------
# Kernels
# ---------------------------------------------------------------------------
def _patch_embed_kernel(p_ref, w_ref, o_ref):
    # p: [TM, K] bf16, w: [K, D] bf16 -> conv1 (stride=kernel=patch) as matmul
    o_ref[...] = jnp.dot(p_ref[...], w_ref[...],
                         preferred_element_type=jnp.float32).astype(o_ref.dtype)


def _vit_kernel(tok_ref, cls_ref, pos_ref, preg, preb,
                ln1g, ln1b, wqkv, bqkv, wo, bo,
                ln2g, ln2b, wfc, bfc, wpj, bpj,
                postg, postb, proj_ref,
                o_ref, xbuf, att_buf, *, heads, normalized, block_b):
    """grid=(B//Bt, L): Bt images through one CLIP ResidualAttentionBlock.

    Layer 0 builds the token streams (CLS ++ patches + pos, ln_pre); the
    last layer applies ln_post + projection (+ L2 normalize) to each CLS
    token.  The residual streams live in the (Bt, S, D) f32 scratch `xbuf`
    across all L layer steps; per-head attention outputs are staged in the
    (S, D) bf16 scratch `att_buf`.
    """
    l = pl.program_id(1)
    bf16 = jnp.bfloat16
    S, D = att_buf.shape
    Dh = D // heads

    # --- layer 0: fused "pre" stage (CLS ++ patches + pos -> ln_pre) ------
    @pl.when(l == 0)
    def _():
        pos = pos_ref[...]
        g, b = preg[...], preb[...]
        cls_tok = cls_ref[...]
        for i in range(block_b):
            x0 = jnp.concatenate(
                [cls_tok, tok_ref[i].astype(jnp.float32)], axis=0) + pos
            xbuf[i] = _layer_norm(x0, g, b)

    # hoist the per-layer weight/bias loads out of the image loop
    g1, b1 = ln1g[0], ln1b[0]
    w_qkv, b_qkv = wqkv[0], bqkv[0]
    w_o, b_o = wo[0], bo[0]
    g2, b2 = ln2g[0], ln2b[0]
    w_fc, b_fc = wfc[0], bfc[0]
    w_pj, b_pj = wpj[0], bpj[0]

    for i in range(block_b):
        x = xbuf[i]                                     # [S, D] f32 residual

        # --- multi-head self-attention (pre-LN) ---------------------------
        # Q is pre-scaled by Dh**-0.5 inside wqkv/bqkv on the host.
        h = _layer_norm(x, g1, b1).astype(bf16)
        qkv = (jnp.dot(h, w_qkv, preferred_element_type=jnp.float32)
               + b_qkv).astype(bf16)                    # [S, 3D] bf16
        # TODO(synk): for Dh == 64, evaluate pairing heads into 128-lane
        # slices (batched dot_general) once its relayout cost is confirmed
        # cheaper than the odd-head lane rotates.
        for hd in range(heads):
            q = qkv[:, hd * Dh:(hd + 1) * Dh]
            k = qkv[:, D + hd * Dh:D + (hd + 1) * Dh]
            v = qkv[:, 2 * D + hd * Dh:2 * D + (hd + 1) * Dh]
            s = lax.dot_general(q, k, (((1,), (1,)), ((), ())),
                                preferred_element_type=jnp.float32)   # [S, S]
            s = s - jnp.max(s, axis=-1, keepdims=True)                # f32
            e = jnp.exp(s)
            p = e * pl.reciprocal(jnp.sum(e, axis=-1, keepdims=True),
                                  approx=True)
            att_buf[:, hd * Dh:(hd + 1) * Dh] = jnp.dot(
                p.astype(bf16), v,
                preferred_element_type=jnp.float32).astype(bf16)
        att = jnp.dot(att_buf[...], w_o,
                      preferred_element_type=jnp.float32) + b_o
        x = x + att

        # --- MLP with QuickGELU (x * sigmoid(1.702 x)) ---------------------
        hm = _layer_norm(x, g2, b2).astype(bf16)
        hm = jnp.dot(hm, w_fc, preferred_element_type=jnp.float32) + b_fc
        hm = hm * jax.nn.sigmoid(1.702 * hm)
        hm = jnp.dot(hm.astype(bf16), w_pj,
                     preferred_element_type=jnp.float32) + b_pj
        xbuf[i] = x + hm

    # --- last layer: ln_post on CLS, projection, optional L2 normalize ----
    # TODO(synk): restrict the last block's attention/MLP to the CLS row
    # (skips ~1/L of the FLOPs).
    @pl.when(l == pl.num_programs(1) - 1)
    def _():
        g, b = postg[...], postb[...]
        proj = proj_ref[...]
        for i in range(block_b):
            hh = _layer_norm(xbuf[i][0:1, :], g, b).astype(bf16)
            z = jnp.dot(hh, proj, preferred_element_type=jnp.float32)
            if normalized:
                z = z * lax.rsqrt(jnp.sum(z * z, axis=-1, keepdims=True)
                                  + 1e-12)
            o_ref[i] = z


# ---------------------------------------------------------------------------
# Wrappers (pallas_call plumbing + glue)
# ---------------------------------------------------------------------------
def _patch_embed(patches, w2d, *, tm=512):
    N, K = patches.shape
    D = w2d.shape[1]
    tm = N if N < tm else tm
    return pl.pallas_call(
        _patch_embed_kernel,
        grid=(pl.cdiv(N, tm),),
        in_specs=[pl.BlockSpec((tm, K), lambda i: (i, 0)),
                  pl.BlockSpec((K, D), lambda i: (0, 0))],
        out_specs=pl.BlockSpec((tm, D), lambda i: (i, 0)),
        out_shape=jax.ShapeDtypeStruct((N, D), jnp.bfloat16),
        compiler_params=pltpu.CompilerParams(
            dimension_semantics=("parallel",)),
    )(patches, w2d)


def _stack(blocks, name, dtype=None):
    w = jnp.stack([blk[name] for blk in blocks], axis=0)
    return w.astype(dtype) if dtype is not None else w


def _pick_block_b(B):
    # Amortize per-layer weight DMA over Bt images; smaller target on v7x
    # (64 MiB VMEM).  Keep Bt a divisor of B.
    cap = _vmem_capacity_bytes()
    target = 8 if cap >= 96 * 2 ** 20 else 4
    bt = 1
    for c in range(1, min(B, target) + 1):
        if B % c == 0:
            bt = c
    return bt


def _vmem_limit_bytes(S, P, D, E, block_b):
    # double-buffered per-layer bf16 weights + f32 biases/LN vectors
    w = 12 * D * D * 2
    b = 13 * D * 4
    # constants / per-step pipelined blocks (double-buffered)
    const = (S * D * 4 + D * 4 + 8 * D * 4 + D * E * 2
             + block_b * P * D * 2 + block_b * E * 4)
    # resident scratch + transient per-image intermediates
    scratch = block_b * S * D * 4 + S * D * 2
    tmp = S * S * 4 + S * 3 * D * 6 + S * 4 * D * 6 + 4 * S * D * 4
    need = 2 * (w + b) + 2 * const + scratch + tmp
    cap = _vmem_capacity_bytes()                       # 64 MiB on v7x
    # TODO(synk): for ViT-L widths on v7x, chunk wfc/wpj along the hidden
    # dim (or pipeline_mode=pl.Buffered(1)) so the layer weights fit.
    return int(min(int(cap * 0.9), max(int(need * 1.4), 64 * 2 ** 20)))


def _transformer(tokens, params, *, heads, normalized, block_b):
    B, P, D = tokens.shape
    blocks = params['blocks']
    L = len(blocks)
    S = P + 1
    E = params['proj'].shape[1]
    bf16, f32 = jnp.bfloat16, jnp.float32
    Dh = D // heads

    cls = params['cls'].reshape(1, D).astype(f32)
    pos = params['pos'].astype(f32)

    # stacked per-layer params; matmul weights in bf16, everything else f32.
    # Fold the 1/sqrt(Dh) attention scale into the Q third of wqkv/bqkv.
    qscale = jnp.concatenate(
        [jnp.full((D,), Dh ** -0.5, f32), jnp.ones((2 * D,), f32)])
    ln1g = _stack(blocks, 'ln1_g'); ln1b = _stack(blocks, 'ln1_b')
    wqkv = (_stack(blocks, 'wqkv') * qscale).astype(bf16)
    bqkv = _stack(blocks, 'bqkv') * qscale
    wo = _stack(blocks, 'wo', bf16); bo = _stack(blocks, 'bo')
    ln2g = _stack(blocks, 'ln2_g'); ln2b = _stack(blocks, 'ln2_b')
    wfc = _stack(blocks, 'wfc', bf16); bfc = _stack(blocks, 'bfc')
    wpj = _stack(blocks, 'wproj', bf16); bpj = _stack(blocks, 'bproj')
    proj = params['proj'].astype(bf16)

    def const_spec(a):
        return pl.BlockSpec(a.shape, lambda b, l, _n=a.ndim: (0,) * _n)

    def layer_spec(a):
        return pl.BlockSpec((1,) + a.shape[1:],
                            lambda b, l, _n=a.ndim: (l,) + (0,) * (_n - 1))

    in_specs = [
        pl.BlockSpec((block_b, P, D), lambda b, l: (b, 0, 0)),   # patch tokens
        const_spec(cls), const_spec(pos),
        const_spec(params['ln_pre_g']), const_spec(params['ln_pre_b']),
        layer_spec(ln1g), layer_spec(ln1b),
        layer_spec(wqkv), layer_spec(bqkv),
        layer_spec(wo), layer_spec(bo),
        layer_spec(ln2g), layer_spec(ln2b),
        layer_spec(wfc), layer_spec(bfc),
        layer_spec(wpj), layer_spec(bpj),
        const_spec(params['ln_post_g']), const_spec(params['ln_post_b']),
        const_spec(proj),
    ]

    out = pl.pallas_call(
        functools.partial(_vit_kernel, heads=heads, normalized=normalized,
                          block_b=block_b),
        grid=(B // block_b, L),
        in_specs=in_specs,
        out_specs=pl.BlockSpec((block_b, 1, E), lambda b, l: (b, 0, 0)),
        out_shape=jax.ShapeDtypeStruct((B, 1, E), jnp.float32),
        scratch_shapes=[pltpu.VMEM((block_b, S, D), jnp.float32),   # residuals
                        pltpu.VMEM((S, D), jnp.bfloat16)],          # attn stage
        compiler_params=pltpu.CompilerParams(
            dimension_semantics=("parallel", "arbitrary"),
            vmem_limit_bytes=_vmem_limit_bytes(S, P, D, E, block_b)),
    )(tokens, cls, pos, params['ln_pre_g'], params['ln_pre_b'],
      ln1g, ln1b, wqkv, bqkv, wo, bo, ln2g, ln2b, wfc, bfc, wpj, bpj,
      params['ln_post_g'], params['ln_post_b'], proj)
    return out.reshape(B, E)


def image_head_forward(images, params, *, patch_size, heads, normalized=False,
                       block_b=None):
    """ImageHead.forward(images, normalized=...) — ViT branch of the encoder."""
    B, C, H, W = images.shape
    grid = H // patch_size
    width = params['conv_w'].shape[0]

    # conv1 (stride = kernel = patch_size, no bias) as patch-extract + matmul
    x = images.reshape(B, C, grid, patch_size, grid, patch_size)
    x = x.transpose(0, 2, 4, 1, 3, 5)                  # [B, gy, gx, C, py, px]
    K = C * patch_size * patch_size
    patches = x.reshape(B * grid * grid, K)
    w2d = params['conv_w'].reshape(width, K).T         # [K, width]
    K_pad = ((K + 127) // 128) * 128                   # 128-align contraction
    if K_pad != K:
        patches = jnp.pad(patches, ((0, 0), (0, K_pad - K)))
        w2d = jnp.pad(w2d, ((0, K_pad - K), (0, 0)))
    tokens = _patch_embed(patches.astype(jnp.bfloat16),
                          w2d.astype(jnp.bfloat16))
    tokens = tokens.reshape(B, grid * grid, width)     # bf16

    if block_b is None:
        block_b = _pick_block_b(B)

    # fused: CLS++tokens+pos -> ln_pre -> L blocks -> ln_post -> proj [-> L2]
    return _transformer(tokens, params, heads=heads, normalized=normalized,
                        block_b=block_b)


# ---------------------------------------------------------------------------
# Deterministic parameter init (shapes from VisualTransformer.__init__)
# ---------------------------------------------------------------------------
def init_params(key, *, width, layers, embed_dim, patch_size, grid, channels=3):
    S = grid * grid + 1
    scale = width ** -0.5
    keys = iter(jax.random.split(key, 8 + 8 * layers))
    f32 = jnp.float32

    def rnd(shape, s=scale):
        return (jax.random.normal(next(keys), shape, f32) * s).astype(f32)

    p = {
        'conv_w': rnd((width, channels, patch_size, patch_size), 0.05),
        'cls': rnd((width,)),
        'pos': rnd((S, width)),
        'ln_pre_g': jnp.ones((1, width), f32),
        'ln_pre_b': jnp.zeros((1, width), f32),
        'ln_post_g': jnp.ones((1, width), f32),
        'ln_post_b': jnp.zeros((1, width), f32),
        'proj': rnd((width, embed_dim)),
        'blocks': [],
    }
    for _ in range(layers):
        p['blocks'].append({
            'ln1_g': jnp.ones((1, width), f32),
            'ln1_b': jnp.zeros((1, width), f32),
            # weights stored [in, out] (pre-transposed vs. nn.Linear's [out, in])
            'wqkv': rnd((width, 3 * width)),
            'bqkv': jnp.zeros((1, 3 * width), f32),
            'wo': rnd((width, width)),
            'bo': jnp.zeros((1, width), f32),
            'ln2_g': jnp.ones((1, width), f32),
            'ln2_b': jnp.zeros((1, width), f32),
            'wfc': rnd((width, 4 * width)),
            'bfc': jnp.zeros((1, 4 * width), f32),
            'wproj': rnd((4 * width, width)),
            'bproj': jnp.zeros((1, width), f32),
        })
    return p


# TODO(synk): Registry / copy_state_dict (checkpoint loading) are host-side
# bookkeeping with no kernel equivalent; ModifiedResNet branch not implemented.

if __name__ == "__main__":
    # small cfg consistent with the ViT branch: heads = width // 64
    B, C, RES, PS = 2, 3, 16, 8
    WIDTH, LAYERS, EMBED = 64, 2, 32
    HEADS = WIDTH // 64           # = 1
    GRID = RES // PS              # = 2  -> S = 5 tokens

    key = jax.random.PRNGKey(0)
    k_img, k_par = jax.random.split(key)
    images = jax.random.normal(k_img, (B, C, RES, RES), jnp.float32)
    params = init_params(k_par, width=WIDTH, layers=LAYERS, embed_dim=EMBED,
                         patch_size=PS, grid=GRID, channels=C)

    z = image_head_forward(images, params, patch_size=PS, heads=HEADS,
                           normalized=False)
    zn = image_head_forward(images, params, patch_size=PS, heads=HEADS,
                            normalized=True)
    jax.block_until_ready((z, zn))

    assert z.shape == (B, EMBED) and zn.shape == (B, EMBED)
    assert bool(jnp.all(jnp.isfinite(z))) and bool(jnp.all(jnp.isfinite(zn)))
    # normalized output must have unit L2 norm
    assert bool(jnp.allclose(jnp.linalg.norm(zn, axis=-1), 1.0, atol=1e-4))
    print("KERNEL_OK")
</pallas_src>

<mosaic_0001>
module attributes {stable_mosaic.version = 11 : i64} {
  func.func @_patch_embed_kernel(%arg0: i32, %arg1: memref<8x256xbf16, #tpu.memory_space<vmem>>, %arg2: memref<256x64xbf16, #tpu.memory_space<vmem>>, %arg3: memref<8x64xbf16, #tpu.memory_space<vmem>>) attributes {dimension_semantics = [#tpu.dimension_semantics<parallel>], iteration_bounds = array<i64: 1>, scalar_prefetch = 0 : i64, scratch_operands = 0 : i64, tpu.core_type = #tpu.core_type<tc>, window_params = [{transform_indices = @transform_0, window_bounds = array<i64: 8, 256>}, {pipeline_mode = #tpu.pipeline_mode<synchronous>, transform_indices = @transform_1, window_bounds = array<i64: 256, 64>}, {transform_indices = @transform_2, window_bounds = array<i64: 8, 64>}]} {
    %c0 = arith.constant 0 : index
    %c0_0 = arith.constant 0 : index
    %0 = vector.load %arg1[%c0, %c0_0] : memref<8x256xbf16, #tpu.memory_space<vmem>>, vector<8x256xbf16>
    %c0_1 = arith.constant 0 : index
    %c0_2 = arith.constant 0 : index
    %1 = vector.load %arg2[%c0_1, %c0_2] : memref<256x64xbf16, #tpu.memory_space<vmem>>, vector<256x64xbf16>
    %cst = arith.constant dense<0.000000e+00> : vector<8x64xf32>
    %2 = tpu.matmul %0, %1, %cst {dimension_numbers = #tpu.dot_dimension_numbers<[1], [0], [0], [1], [0, 0, 1, 1], [], []>} : vector<8x256xbf16>, vector<256x64xbf16>, vector<8x64xf32> -> vector<8x64xf32>
    %3 = arith.truncf %2 : vector<8x64xf32> to vector<8x64xbf16>
    %c0_3 = arith.constant 0 : index
    %c0_4 = arith.constant 0 : index
    %4 = vector.load %arg3[%c0_3, %c0_4] : memref<8x64xbf16, #tpu.memory_space<vmem>>, vector<8x64xbf16>
    tpu.vector_store %arg3[%c0_3, %c0_4], %3 {strides = array<i32>} : memref<8x64xbf16, #tpu.memory_space<vmem>>, vector<8x64xbf16>,
    return
  }
  func.func @transform_0(%arg0: i32) -> (i32, i32) {
    %c0_i32 = arith.constant 0 : i32
    %c0_i32_0 = arith.constant 0 : i32
    return %arg0, %c0_i32 : i32, i32
  }
  func.func @transform_1(%arg0: i32) -> (i32, i32) {
    %c0_i32 = arith.constant 0 : i32
    %c0_i32_0 = arith.constant 0 : i32
    %c0_i32_1 = arith.constant 0 : i32
    return %c0_i32, %c0_i32_0 : i32, i32
  }
  func.func @transform_2(%arg0: i32) -> (i32, i32) {
    %c0_i32 = arith.constant 0 : i32
    %c0_i32_0 = arith.constant 0 : i32
    return %arg0, %c0_i32 : i32, i32
  }
}

</mosaic_0001>

<bundles_post_ra>
// kernel: tpu_custom_call.1
= control target key start
LH: loop header
LB: loop body
LE: loop exit
PB: predicated region body
PF: predicated region fallthrough
CT: control target
= control target key end

     0   :  { %s357_s0 = inlined_call_operand.vmem [shape: bf16[8,256], index: 0, kind: input, shape index: {}]   ;;  %s358_s1 = inlined_call_operand.vmem [shape: bf16[256,64], index: 1, kind: input, shape index: {}]   ;;  %s359_s2 = inlined_call_operand.hbm [shape: bf16[8,64], index: 2, kind: output, shape index: {}]  }
   0x1   :  { %v247_v0 = vld [vmem:[%s358_s1 + $0x78] sm:$0xff]   ;;  %v249_v2 = vld [vmem:[%s358_s1 + $0x70] sm:$0xff]   ;;  %v251_v4 = vld [vmem:[%s358_s1 + $0x68] sm:$0xff]  }
   0x2   :  { %v248_v1 = vld [vmem:[%s358_s1 + $0x38] sm:$0xff]   ;;  %224 = vmatprep.subr.bf16.mxu0 %v247_v0  ;;  %v250_v3 = vld [vmem:[%s358_s1 + $0x30] sm:$0xff]   ;;  %v252_v5 = vld [vmem:[%s358_s1 + $0x28] sm:$0xff]  }
   0x3   :  { %225 = vmatpush3.bf16.msra.mxu0 %v248_v1  ;;  %v253_v6 = vld [vmem:[%s358_s1 + $0x60] sm:$0xff]   ;;  %v255_v8 = vld [vmem:[%s358_s1 + $0x58] sm:$0xff]   ;;  %v257_v10 = vld [vmem:[%s358_s1 + $0x50] sm:$0xff]  }
   0x4   :  { %226 = vmatprep.subr.bf16.mxu0 %v249_v2  ;;  %v254_v7 = vld [vmem:[%s358_s1 + $0x20] sm:$0xff]   ;;  %v256_v9 = vld [vmem:[%s358_s1 + $0x18] sm:$0xff]  }
   0x5   :  { %v13_v11 = vld [vmem:[%s357_s0] sm:$0xff] }
   0x7   :  { %227 = vmatpush3.bf16.msra.mxu0 %v250_v3 }
   0x8   :  { %228 = vmatprep.subr.bf16.mxu0 %v251_v4 }
   0xb   :  { %229 = vmatpush3.bf16.msra.mxu0 %v252_v5 }
   0xc   :  { %230 = vmatprep.subr.bf16.mxu0 %v253_v6 }
   0xf   :  { %231 = vmatpush3.bf16.msra.mxu0 %v254_v7 }
  0x10   :  { %232 = vmatprep.subr.bf16.mxu0 %v255_v8 }
  0x11   :  { %7 = vsyncpa [#allocation3], 0  ;;  %v207_v12 = vcombine.high %v13_v11, %v13_v11  ;;  %v258_v13 = vld [vmem:[%s358_s1 + $0x10] sm:$0xff]   ;;  %v259_v14 = vld [vmem:[%s358_s1 + $0x48] sm:$0xff]   ;;  %v206_v18 = vcombine.low %v13_v11, %v13_v11  ;;  %s287_s14 = smov [#allocation2]   ;;  %vm190_vm0 = vcmask 519168  }
  0x12   :  { %v260_v15 = vld [vmem:[%s358_s1 + $0x8] sm:$0xff]   ;;  %v261_v16 = vld [vmem:[%s358_s1 + $0x40] sm:$0xff]   ;;  %s198_s15 = sshll.u32 %s287_s14, 4  ;;  %s199_s15 = int_to_ptr.vmem [resolvable:$true] %s198_s15 }
  0x13   :  { %233 = vmatpush3.bf16.msra.mxu0 %v256_v9  ;;  %181 = vmatprep.mubr.bf16.mxu0 %v207_v12  ;;  %v262_v17 = vld [vmem:[%s358_s1] sm:$0xff]   ;;  %s265_s16 = scalar_lea.vmem %s199_s15, 64  ;;  %p270_p1 = scmp.lt.s32.totalorder %s199_s15, %s199_s15 }
  0x14   :  { %234 = vmatprep.subr.bf16.mxu0 %v257_v10  ;;  %p266_p0 = scmp.ne.s32.totalorder %s199_s15, %s265_s16  ;;  %p271_p2 = scmp.lt.s32.totalorder %s265_s16, %s265_s16 }
  0x16   :  { %p272_p3 = por %p271_p2, %p270_p1 }
  0x17   :  { %235 = vmatpush3.bf16.msra.mxu0 %v258_v13 }
  0x18   :  { %236 = vmatprep.subr.bf16.mxu0 %v259_v14  ;;  %p273_p4 = pnand %p272_p3, %p266_p0 }
  0x1b   :  { %237 = vmatpush3.bf16.msra.mxu0 %v260_v15 }
  0x1c   :  { %238 = vmatprep.subr.bf16.mxu0 %v261_v16 }
  0x1f   :  { %239 = vmatpush3.bf16.msra.mxu0 %v262_v17 }
  0x22   :  { %182 = vmatmul.mubr.bf16.vlgmr.msra.gmra.mxu0 %v206_v18 }
  0xe2   :  { %v240_v19 = vpop.f32.mrf.mxu0 }
  0xe4   :  { %v241_v20 = vpop.f32.mrf.mxu0 }
  0xe5   :  { %v242_v21 = vadd.f32 %v241_v20, %v240_v19 }
  0xe6   :  { %v243_v22 = vpop.f32.mrf.mxu0 }
  0xe7   :  { %v189_v23 = vpack.c.bf16 %v242_v21, %v242_v21 }
  0xe8   :  { %v244_v24 = vpop.f32.mrf.mxu0 }
  0xe9   :  { %191 = vst.msk [vmem:[#allocation2] sm:$0xf] %vm190_vm0, %v189_v23 }
  0xea   :  { %276 = shalt.err (!%p273_p4)
}
  0xeb   :  { %201 = dma.vmem_to_hbm [thread:$0]  %s199_s15, 64, %s359_s2, [#allocation3]  }
  0xec   :  { %285 = dma.done.wait [#allocation3], 64  }
  0xed   :  { %286 = vsyncadd [#allocation3], 4294967232 }
  0xee   :  { %205 = vsyncpa [#allocation3], 1 }

</bundles_post_ra>
